<compile_context>
chip_gen: v7x
topology: tpu7x:2x2x1
jax: 0.10.0
libtpu: 0.0.40
codegen_flags: <defaults>
</compile_context>

<pallas_src>
import jax
import jax.numpy as jnp
import numpy as np
from jax import lax
from jax.experimental import pallas as pl
from jax.experimental.pallas import tpu as pltpu  # noqa: F401  (TPU backend import)

# Problem sizes (small, consistent with the module: hid_dim % n_heads == 0).
B = 2          # batch
S = 8          # sequence length
H = 32         # hid_dim
N_HEADS = 4
HEAD_DIM = H // N_HEADS
BS = B * S

INV_SCALE = float(1.0 / np.sqrt(HEAD_DIM))
NEG_BIG = -1e30   # additive mask for cross-batch positions (exp underflows to exactly 0)


def mha_kernel(q_ref, k_ref, v_ref, wqkv_ref, bqkv_ref, wo_ref, bo_ref,
               negmask_ref, bdmask_ref, out_ref, attn_ref):
    """Single invocation; everything lives in VMEM.

    q_ref/k_ref/v_ref : (B, S, H)      raw inputs
    wqkv_ref          : (3H, 3H)       block-diag(Wq, Wk, Wv), each [in, out]   (hoisted const)
    bqkv_ref          : (1, 3H)        [bq | bk | bv]                            (hoisted const)
    wo_ref            : (H, H)         fc_o weight [in, out]
    bo_ref            : (1, H)         fc_o bias
    negmask_ref       : (BS, NH*BS)    0 on same-batch cols, -1e30 across batches (hoisted const)
    bdmask_ref        : (NH*BS, H)     1 where col//head_dim == row//BS           (hoisted const)
    out_ref           : (B, S, H)
    attn_ref          : (B, N_HEADS, S, S)
    """
    # Flatten (B, S, H) -> (B*S, H) in-kernel (sublane-aligned concats); keeps the
    # wrapper free of per-call layout ops.
    q_in = jnp.concatenate([q_ref[b] for b in range(B)], axis=0)   # (BS, H)
    k_in = jnp.concatenate([k_ref[b] for b in range(B)], axis=0)   # (BS, H)
    v_in = jnp.concatenate([v_ref[b] for b in range(B)], axis=0)   # (BS, H)
    x = jnp.concatenate([q_in, k_in, v_in], axis=-1)               # (BS, 3H)

    # Fused Q/K/V projection: one MXU push instead of three.
    qkv = jnp.dot(x, wqkv_ref[...], preferred_element_type=jnp.float32) + bqkv_ref[0]

    # Fold 1/sqrt(head_dim) into Q once (instead of dividing each energy tile).
    q = qkv[:, :H] * INV_SCALE
    k = qkv[:, H:2 * H]
    v = qkv[:, 2 * H:]

    bd = bdmask_ref[...]   # (NH*BS, H) block-diag 0/1 mask shared by K_bd and V_bd

    # Head-folded Q @ K^T in ONE push: K_bd[h*BS+j, :] = k[j, :] masked to head-h
    # feature columns, so contracting the feature axis gives
    #   e_wide[i, h*BS+j] = q_h[i] . k_h[j]   (no explicit transpose needed).
    k_bd = jnp.concatenate([k] * N_HEADS, axis=0) * bd              # (NH*BS, H)
    e_wide = lax.dot_general(q, k_bd, (((1,), (1,)), ((), ())),
                             preferred_element_type=jnp.float32)    # (BS, NH*BS)
    e_wide = e_wide + negmask_ref[...]   # cross-batch entries -> -1e30 -> exp == 0 exactly

    # Per-head numerically stable softmax on lane slices (VPU/EUP/XLU only — no MXU
    # pushes in this loop). The two in-batch (S,S) diagonal blocks per head are
    # stored straight into the (B, N_HEADS, S, S) output: no wrapper gather/transpose.
    attn_parts = []
    for h in range(N_HEADS):   # static unrolled loop over heads
        e_h = e_wide[:, h * BS:(h + 1) * BS]                 # (BS, BS)
        m = jnp.max(e_h, axis=-1, keepdims=True)
        p = jnp.exp(e_h - m)
        denom = jnp.sum(p, axis=-1, keepdims=True)
        a_h = p * pl.reciprocal(denom, approx=False)         # exact reciprocal (1e-5 tol)
        attn_parts.append(a_h)
        for b in range(B):
            attn_ref[b, h, :, :] = a_h[b * S:(b + 1) * S, b * S:(b + 1) * S]
    attn_wide = jnp.concatenate(attn_parts, axis=-1)         # (BS, NH*BS)

    # Head-folded attn @ V in ONE push: V_bd puts head h's values in feature columns
    # h*hd:(h+1)*hd, so the result is the already re-assembled context (BS, H).
    v_bd = jnp.concatenate([v] * N_HEADS, axis=0) * bd                   # (NH*BS, H)
    ctx = jnp.dot(attn_wide, v_bd, preferred_element_type=jnp.float32)   # (BS, H)

    # fc_o: single (BS,H)@(H,H) matmul (was 4 per-head accumulations).
    out = jnp.dot(ctx, wo_ref[...], preferred_element_type=jnp.float32) + bo_ref[0]
    for b in range(B):
        out_ref[b, :, :] = out[b * S:(b + 1) * S, :].astype(out_ref.dtype)


# Grid-less pallas_call: whole problem is VMEM-resident; default full-array BlockSpecs.
_MHA_CALL = pl.pallas_call(
    mha_kernel,
    out_shape=(
        jax.ShapeDtypeStruct((B, S, H), jnp.float32),
        jax.ShapeDtypeStruct((B, N_HEADS, S, S), jnp.float32),
    ),
)


def multi_head_attention(query, key, value, kparams):
    """query/key/value: (B, S, H) f32. Returns (x (B,S,H), attention (B,n_heads,S,S)).

    The wrapper is a single dispatch: all constants are prebuilt in `kparams`
    and all layout work happens inside the kernel.
    """
    return _MHA_CALL(query, key, value,
                     kparams["w_qkv"], kparams["b_qkv"],
                     kparams["wo"], kparams["bo"],
                     kparams["negmask"], kparams["bd_mask"])


def prepare_kernel_params(params):
    """Build all input-independent kernel operands ONCE (hoisted out of the per-call path)."""
    wq = np.asarray(params["wq"])
    wk = np.asarray(params["wk"])
    wv = np.asarray(params["wv"])
    bq = np.asarray(params["bq"])
    bk = np.asarray(params["bk"])
    bv = np.asarray(params["bv"])

    # Block-diagonal fused QKV weight so one matmul projects all three inputs.
    w_qkv = np.zeros((3 * H, 3 * H), np.float32)
    w_qkv[0:H, 0:H] = wq
    w_qkv[H:2 * H, H:2 * H] = wk
    w_qkv[2 * H:, 2 * H:] = wv
    b_qkv = np.concatenate([bq, bk, bv], axis=1).astype(np.float32)      # (1, 3H)

    # Additive mask that zeroes cross-batch attention inside the folded matmuls,
    # tiled across heads to match e_wide's (BS, NH*BS) layout.
    row_batch = np.arange(BS) // S
    neg = np.where(row_batch[:, None] == row_batch[None, :], 0.0, NEG_BIG).astype(np.float32)
    negmask = np.tile(neg, (1, N_HEADS))                                 # (BS, NH*BS)

    # Block-diag head mask shared by K_bd and V_bd construction in-kernel.
    r_head = (np.arange(N_HEADS * BS) // BS)[:, None]
    c_head = (np.arange(H) // HEAD_DIM)[None, :]
    bd_mask = (r_head == c_head).astype(np.float32)                      # (NH*BS, H)

    return dict(
        w_qkv=jnp.asarray(w_qkv), b_qkv=jnp.asarray(b_qkv),
        wo=params["wo"], bo=params["bo"],
        negmask=jnp.asarray(negmask), bd_mask=jnp.asarray(bd_mask),
    )


def reference_mha(query, key, value, params):
    """Pure-JAX reference mirroring the PyTorch forward (mask=None, eval mode)."""
    def linear(x, w, b):
        return x @ w + b[0]

    q = linear(query, params["wq"], params["bq"])
    k = linear(key, params["wk"], params["bk"])
    v = linear(value, params["wv"], params["bv"])

    def split_heads(t):
        return t.reshape(B, S, N_HEADS, HEAD_DIM).transpose(0, 2, 1, 3)

    qh, kh, vh = split_heads(q), split_heads(k), split_heads(v)
    energy = jnp.einsum("bhqd,bhkd->bhqk", qh, kh) / jnp.sqrt(jnp.float32(HEAD_DIM))
    attn = jax.nn.softmax(energy, axis=-1)
    ctx = jnp.einsum("bhqk,bhkd->bhqd", attn, vh)
    ctx = ctx.transpose(0, 2, 1, 3).reshape(B, S, H)
    x = linear(ctx, params["wo"], params["bo"])
    return x, attn


def init_params(key):
    """Deterministic init: PyTorch-Linear-shaped weights [out,in], transposed to [in,out]."""
    keys = jax.random.split(key, 8)
    bound = 1.0 / np.sqrt(H)

    def linear_params(kw, kb):
        w = jax.random.uniform(kw, (H, H), jnp.float32, -bound, bound)  # [out, in]
        b = jax.random.uniform(kb, (1, H), jnp.float32, -bound, bound)
        return w.T, b  # transpose to [in, out]

    wq, bq = linear_params(keys[0], keys[1])
    wk, bk = linear_params(keys[2], keys[3])
    wv, bv = linear_params(keys[4], keys[5])
    wo, bo = linear_params(keys[6], keys[7])
    return dict(wq=wq, bq=bq, wk=wk, bk=bk, wv=wv, bv=bv, wo=wo, bo=bo)


if __name__ == "__main__":
    root = jax.random.PRNGKey(0)
    k_params, kq, kk, kv = jax.random.split(root, 4)

    params = init_params(k_params)
    kparams = prepare_kernel_params(params)   # constants hoisted out of the call path

    query = jax.random.normal(kq, (B, S, H), jnp.float32)
    key_in = jax.random.normal(kk, (B, S, H), jnp.float32)
    value = jax.random.normal(kv, (B, S, H), jnp.float32)

    x_out, attn_out = multi_head_attention(query, key_in, value, kparams)
    x_out = jax.block_until_ready(x_out)
    attn_out = jax.block_until_ready(attn_out)

    x_expected, attn_expected = reference_mha(query, key_in, value, params)
    np.testing.assert_allclose(np.asarray(x_out), np.asarray(x_expected),
                               rtol=1e-5, atol=1e-5)
    np.testing.assert_allclose(np.asarray(attn_out), np.asarray(attn_expected),
                               rtol=1e-5, atol=1e-5)

    print("KERNEL_OK")
</pallas_src>

<mosaic_0001>
module attributes {stable_mosaic.version = 11 : i64} {
  func.func @mha_kernel(%arg0: memref<2x8x32xf32, #tpu.memory_space<vmem>>, %arg1: memref<2x8x32xf32, #tpu.memory_space<vmem>>, %arg2: memref<2x8x32xf32, #tpu.memory_space<vmem>>, %arg3: memref<96x96xf32, #tpu.memory_space<vmem>>, %arg4: memref<1x96xf32, #tpu.memory_space<vmem>>, %arg5: memref<32x32xf32, #tpu.memory_space<vmem>>, %arg6: memref<1x32xf32, #tpu.memory_space<vmem>>, %arg7: memref<16x64xf32, #tpu.memory_space<vmem>>, %arg8: memref<64x32xf32, #tpu.memory_space<vmem>>, %arg9: memref<2x8x32xf32, #tpu.memory_space<vmem>>, %arg10: memref<2x4x8x8xf32, #tpu.memory_space<vmem>>) attributes {dimension_semantics = [], scalar_prefetch = 0 : i64, scratch_operands = 0 : i64, tpu.core_type = #tpu.core_type<tc>} {
    %c0 = arith.constant 0 : index
    %c0_0 = arith.constant 0 : index
    %c0_1 = arith.constant 0 : index
    %0 = vector.load %arg0[%c0, %c0_0, %c0_1] : memref<2x8x32xf32, #tpu.memory_space<vmem>>, vector<1x8x32xf32>
    %1 = vector.shape_cast %0 : vector<1x8x32xf32> to vector<8x32xf32>
    %c1 = arith.constant 1 : index
    %c0_2 = arith.constant 0 : index
    %c0_3 = arith.constant 0 : index
    %2 = vector.load %arg0[%c1, %c0_2, %c0_3] : memref<2x8x32xf32, #tpu.memory_space<vmem>>, vector<1x8x32xf32>
    %3 = vector.shape_cast %2 : vector<1x8x32xf32> to vector<8x32xf32>
    %4 = tpu.concatenate %1, %3 in 0 : vector<8x32xf32>, vector<8x32xf32> -> vector<16x32xf32>
    %c0_4 = arith.constant 0 : index
    %c0_5 = arith.constant 0 : index
    %c0_6 = arith.constant 0 : index
    %5 = vector.load %arg1[%c0_4, %c0_5, %c0_6] : memref<2x8x32xf32, #tpu.memory_space<vmem>>, vector<1x8x32xf32>
    %6 = vector.shape_cast %5 : vector<1x8x32xf32> to vector<8x32xf32>
    %c1_7 = arith.constant 1 : index
    %c0_8 = arith.constant 0 : index
    %c0_9 = arith.constant 0 : index
    %7 = vector.load %arg1[%c1_7, %c0_8, %c0_9] : memref<2x8x32xf32, #tpu.memory_space<vmem>>, vector<1x8x32xf32>
    %8 = vector.shape_cast %7 : vector<1x8x32xf32> to vector<8x32xf32>
    %9 = tpu.concatenate %6, %8 in 0 : vector<8x32xf32>, vector<8x32xf32> -> vector<16x32xf32>
    %c0_10 = arith.constant 0 : index
    %c0_11 = arith.constant 0 : index
    %c0_12 = arith.constant 0 : index
    %10 = vector.load %arg2[%c0_10, %c0_11, %c0_12] : memref<2x8x32xf32, #tpu.memory_space<vmem>>, vector<1x8x32xf32>
    %11 = vector.shape_cast %10 : vector<1x8x32xf32> to vector<8x32xf32>
    %c1_13 = arith.constant 1 : index
    %c0_14 = arith.constant 0 : index
    %c0_15 = arith.constant 0 : index
    %12 = vector.load %arg2[%c1_13, %c0_14, %c0_15] : memref<2x8x32xf32, #tpu.memory_space<vmem>>, vector<1x8x32xf32>
    %13 = vector.shape_cast %12 : vector<1x8x32xf32> to vector<8x32xf32>
    %14 = tpu.concatenate %11, %13 in 0 : vector<8x32xf32>, vector<8x32xf32> -> vector<16x32xf32>
    %15 = tpu.concatenate %4, %9, %14 in 1 : vector<16x32xf32>, vector<16x32xf32>, vector<16x32xf32> -> vector<16x96xf32>
    %c0_16 = arith.constant 0 : index
    %c0_17 = arith.constant 0 : index
    %16 = vector.load %arg3[%c0_16, %c0_17] : memref<96x96xf32, #tpu.memory_space<vmem>>, vector<96x96xf32>
    %cst = arith.constant dense<0.000000e+00> : vector<16x96xf32>
    %17 = tpu.matmul %15, %16, %cst {dimension_numbers = #tpu.dot_dimension_numbers<[1], [0], [0], [1], [0, 0, 1, 1], [], []>} : vector<16x96xf32>, vector<96x96xf32>, vector<16x96xf32> -> vector<16x96xf32>
    %c0_18 = arith.constant 0 : index
    %c0_19 = arith.constant 0 : index
    %18 = vector.load %arg4[%c0_18, %c0_19] : memref<1x96xf32, #tpu.memory_space<vmem>>, vector<1x96xf32>
    %19 = vector.shape_cast %18 : vector<1x96xf32> to vector<96xf32>
    %20 = vector.shape_cast %19 : vector<96xf32> to vector<1x96xf32>
    %21 = vector.broadcast %20 : vector<1x96xf32> to vector<16x96xf32>
    %22 = arith.addf %17, %21 : vector<16x96xf32>
    %23 = vector.extract_strided_slice %22 {offsets = [0, 0], sizes = [16, 32], strides = [1, 1]} : vector<16x96xf32> to vector<16x32xf32>
    %cst_20 = arith.constant 0.353553385 : f32
    %24 = vector.broadcast %cst_20 : f32 to vector<16x32xf32>
    %25 = arith.mulf %23, %24 : vector<16x32xf32>
    %26 = vector.extract_strided_slice %22 {offsets = [0, 32], sizes = [16, 32], strides = [1, 1]} : vector<16x96xf32> to vector<16x32xf32>
    %27 = vector.extract_strided_slice %22 {offsets = [0, 64], sizes = [16, 32], strides = [1, 1]} : vector<16x96xf32> to vector<16x32xf32>
    %c0_21 = arith.constant 0 : index
    %c0_22 = arith.constant 0 : index
    %28 = vector.load %arg8[%c0_21, %c0_22] : memref<64x32xf32, #tpu.memory_space<vmem>>, vector<64x32xf32>
    %29 = tpu.concatenate %26, %26, %26, %26 in 0 : vector<16x32xf32>, vector<16x32xf32>, vector<16x32xf32>, vector<16x32xf32> -> vector<64x32xf32>
    %30 = arith.mulf %29, %28 : vector<64x32xf32>
    %cst_23 = arith.constant dense<0.000000e+00> : vector<16x64xf32>
    %31 = tpu.matmul %25, %30, %cst_23 {dimension_numbers = #tpu.dot_dimension_numbers<[1], [1], [0], [0], [0, 0, 1, 0], [], []>} : vector<16x32xf32>, vector<64x32xf32>, vector<16x64xf32> -> vector<16x64xf32>
    %c0_24 = arith.constant 0 : index
    %c0_25 = arith.constant 0 : index
    %32 = vector.load %arg7[%c0_24, %c0_25] : memref<16x64xf32, #tpu.memory_space<vmem>>, vector<16x64xf32>
    %33 = arith.addf %31, %32 : vector<16x64xf32>
    %34 = vector.extract_strided_slice %33 {offsets = [0, 0], sizes = [16, 16], strides = [1, 1]} : vector<16x64xf32> to vector<16x16xf32>
    %cst_26 = arith.constant dense<0xFF800000> : vector<16xf32>
    %35 = vector.multi_reduction <maximumf>, %34, %cst_26 [1] : vector<16x16xf32> to vector<16xf32>
    %36 = vector.shape_cast %35 : vector<16xf32> to vector<16x1xf32>
    %37 = vector.broadcast %36 : vector<16x1xf32> to vector<16x16xf32>
    %38 = arith.subf %34, %37 : vector<16x16xf32>
    %39 = math.exp %38 : vector<16x16xf32>
    %cst_27 = arith.constant dense<0.000000e+00> : vector<16xf32>
    %40 = vector.multi_reduction <add>, %39, %cst_27 [1] : vector<16x16xf32> to vector<16xf32>
    %41 = vector.shape_cast %40 : vector<16xf32> to vector<16x1xf32>
    %42 = tpu.reciprocal %41 : vector<16x1xf32> -> vector<16x1xf32>
    %43 = vector.broadcast %42 : vector<16x1xf32> to vector<16x16xf32>
    %44 = arith.mulf %39, %43 : vector<16x16xf32>
    %45 = vector.extract_strided_slice %44 {offsets = [0, 0], sizes = [8, 8], strides = [1, 1]} : vector<16x16xf32> to vector<8x8xf32>
    %c0_28 = arith.constant 0 : index
    %c0_29 = arith.constant 0 : index
    %c0_30 = arith.constant 0 : index
    %c0_31 = arith.constant 0 : index
    %46 = vector.load %arg10[%c0_28, %c0_29, %c0_30, %c0_31] : memref<2x4x8x8xf32, #tpu.memory_space<vmem>>, vector<1x1x8x8xf32>
    %47 = vector.shape_cast %46 : vector<1x1x8x8xf32> to vector<8x8xf32>
    %48 = vector.shape_cast %45 : vector<8x8xf32> to vector<1x1x8x8xf32>
    tpu.vector_store %arg10[%c0_28, %c0_29, %c0_30, %c0_31], %48 {strides = array<i32>} : memref<2x4x8x8xf32, #tpu.memory_space<vmem>>, vector<1x1x8x8xf32>,
    %49 = vector.extract_strided_slice %44 {offsets = [8, 8], sizes = [8, 8], strides = [1, 1]} : vector<16x16xf32> to vector<8x8xf32>
    %c1_32 = arith.constant 1 : index
    %c0_33 = arith.constant 0 : index
    %c0_34 = arith.constant 0 : index
    %c0_35 = arith.constant 0 : index
    %50 = vector.load %arg10[%c1_32, %c0_33, %c0_34, %c0_35] : memref<2x4x8x8xf32, #tpu.memory_space<vmem>>, vector<1x1x8x8xf32>
    %51 = vector.shape_cast %50 : vector<1x1x8x8xf32> to vector<8x8xf32>
    %52 = vector.shape_cast %49 : vector<8x8xf32> to vector<1x1x8x8xf32>
    tpu.vector_store %arg10[%c1_32, %c0_33, %c0_34, %c0_35], %52 {strides = array<i32>} : memref<2x4x8x8xf32, #tpu.memory_space<vmem>>, vector<1x1x8x8xf32>,
    %53 = vector.extract_strided_slice %33 {offsets = [0, 16], sizes = [16, 16], strides = [1, 1]} : vector<16x64xf32> to vector<16x16xf32>
    %cst_36 = arith.constant dense<0xFF800000> : vector<16xf32>
    %54 = vector.multi_reduction <maximumf>, %53, %cst_36 [1] : vector<16x16xf32> to vector<16xf32>
    %55 = vector.shape_cast %54 : vector<16xf32> to vector<16x1xf32>
    %56 = vector.broadcast %55 : vector<16x1xf32> to vector<16x16xf32>
    %57 = arith.subf %53, %56 : vector<16x16xf32>
    %58 = math.exp %57 : vector<16x16xf32>
    %cst_37 = arith.constant dense<0.000000e+00> : vector<16xf32>
    %59 = vector.multi_reduction <add>, %58, %cst_37 [1] : vector<16x16xf32> to vector<16xf32>
    %60 = vector.shape_cast %59 : vector<16xf32> to vector<16x1xf32>
    %61 = tpu.reciprocal %60 : vector<16x1xf32> -> vector<16x1xf32>
    %62 = vector.broadcast %61 : vector<16x1xf32> to vector<16x16xf32>
    %63 = arith.mulf %58, %62 : vector<16x16xf32>
    %64 = vector.extract_strided_slice %63 {offsets = [0, 0], sizes = [8, 8], strides = [1, 1]} : vector<16x16xf32> to vector<8x8xf32>
    %c0_38 = arith.constant 0 : index
    %c1_39 = arith.constant 1 : index
    %c0_40 = arith.constant 0 : index
    %c0_41 = arith.constant 0 : index
    %65 = vector.load %arg10[%c0_38, %c1_39, %c0_40, %c0_41] : memref<2x4x8x8xf32, #tpu.memory_space<vmem>>, vector<1x1x8x8xf32>
    %66 = vector.shape_cast %65 : vector<1x1x8x8xf32> to vector<8x8xf32>
    %67 = vector.shape_cast %64 : vector<8x8xf32> to vector<1x1x8x8xf32>
    tpu.vector_store %arg10[%c0_38, %c1_39, %c0_40, %c0_41], %67 {strides = array<i32>} : memref<2x4x8x8xf32, #tpu.memory_space<vmem>>, vector<1x1x8x8xf32>,
    %68 = vector.extract_strided_slice %63 {offsets = [8, 8], sizes = [8, 8], strides = [1, 1]} : vector<16x16xf32> to vector<8x8xf32>
    %c1_42 = arith.constant 1 : index
    %c1_43 = arith.constant 1 : index
    %c0_44 = arith.constant 0 : index
    %c0_45 = arith.constant 0 : index
    %69 = vector.load %arg10[%c1_42, %c1_43, %c0_44, %c0_45] : memref<2x4x8x8xf32, #tpu.memory_space<vmem>>, vector<1x1x8x8xf32>
    %70 = vector.shape_cast %69 : vector<1x1x8x8xf32> to vector<8x8xf32>
    %71 = vector.shape_cast %68 : vector<8x8xf32> to vector<1x1x8x8xf32>
    tpu.vector_store %arg10[%c1_42, %c1_43, %c0_44, %c0_45], %71 {strides = array<i32>} : memref<2x4x8x8xf32, #tpu.memory_space<vmem>>, vector<1x1x8x8xf32>,
    %72 = vector.extract_strided_slice %33 {offsets = [0, 32], sizes = [16, 16], strides = [1, 1]} : vector<16x64xf32> to vector<16x16xf32>
    %cst_46 = arith.constant dense<0xFF800000> : vector<16xf32>
    %73 = vector.multi_reduction <maximumf>, %72, %cst_46 [1] : vector<16x16xf32> to vector<16xf32>
    %74 = vector.shape_cast %73 : vector<16xf32> to vector<16x1xf32>
    %75 = vector.broadcast %74 : vector<16x1xf32> to vector<16x16xf32>
    %76 = arith.subf %72, %75 : vector<16x16xf32>
    %77 = math.exp %76 : vector<16x16xf32>
    %cst_47 = arith.constant dense<0.000000e+00> : vector<16xf32>
    %78 = vector.multi_reduction <add>, %77, %cst_47 [1] : vector<16x16xf32> to vector<16xf32>
    %79 = vector.shape_cast %78 : vector<16xf32> to vector<16x1xf32>
    %80 = tpu.reciprocal %79 : vector<16x1xf32> -> vector<16x1xf32>
    %81 = vector.broadcast %80 : vector<16x1xf32> to vector<16x16xf32>
    %82 = arith.mulf %77, %81 : vector<16x16xf32>
    %83 = vector.extract_strided_slice %82 {offsets = [0, 0], sizes = [8, 8], strides = [1, 1]} : vector<16x16xf32> to vector<8x8xf32>
    %c0_48 = arith.constant 0 : index
    %c2 = arith.constant 2 : index
    %c0_49 = arith.constant 0 : index
    %c0_50 = arith.constant 0 : index
    %84 = vector.load %arg10[%c0_48, %c2, %c0_49, %c0_50] : memref<2x4x8x8xf32, #tpu.memory_space<vmem>>, vector<1x1x8x8xf32>
    %85 = vector.shape_cast %84 : vector<1x1x8x8xf32> to vector<8x8xf32>
    %86 = vector.shape_cast %83 : vector<8x8xf32> to vector<1x1x8x8xf32>
    tpu.vector_store %arg10[%c0_48, %c2, %c0_49, %c0_50], %86 {strides = array<i32>} : memref<2x4x8x8xf32, #tpu.memory_space<vmem>>, vector<1x1x8x8xf32>,
    %87 = vector.extract_strided_slice %82 {offsets = [8, 8], sizes = [8, 8], strides = [1, 1]} : vector<16x16xf32> to vector<8x8xf32>
    %c1_51 = arith.constant 1 : index
    %c2_52 = arith.constant 2 : index
    %c0_53 = arith.constant 0 : index
    %c0_54 = arith.constant 0 : index
    %88 = vector.load %arg10[%c1_51, %c2_52, %c0_53, %c0_54] : memref<2x4x8x8xf32, #tpu.memory_space<vmem>>, vector<1x1x8x8xf32>
    %89 = vector.shape_cast %88 : vector<1x1x8x8xf32> to vector<8x8xf32>
    %90 = vector.shape_cast %87 : vector<8x8xf32> to vector<1x1x8x8xf32>
    tpu.vector_store %arg10[%c1_51, %c2_52, %c0_53, %c0_54], %90 {strides = array<i32>} : memref<2x4x8x8xf32, #tpu.memory_space<vmem>>, vector<1x1x8x8xf32>,
    %91 = vector.extract_strided_slice %33 {offsets = [0, 48], sizes = [16, 16], strides = [1, 1]} : vector<16x64xf32> to vector<16x16xf32>
    %cst_55 = arith.constant dense<0xFF800000> : vector<16xf32>
    %92 = vector.multi_reduction <maximumf>, %91, %cst_55 [1] : vector<16x16xf32> to vector<16xf32>
    %93 = vector.shape_cast %92 : vector<16xf32> to vector<16x1xf32>
    %94 = vector.broadcast %93 : vector<16x1xf32> to vector<16x16xf32>
    %95 = arith.subf %91, %94 : vector<16x16xf32>
    %96 = math.exp %95 : vector<16x16xf32>
    %cst_56 = arith.constant dense<0.000000e+00> : vector<16xf32>
    %97 = vector.multi_reduction <add>, %96, %cst_56 [1] : vector<16x16xf32> to vector<16xf32>
    %98 = vector.shape_cast %97 : vector<16xf32> to vector<16x1xf32>
    %99 = tpu.reciprocal %98 : vector<16x1xf32> -> vector<16x1xf32>
    %100 = vector.broadcast %99 : vector<16x1xf32> to vector<16x16xf32>
    %101 = arith.mulf %96, %100 : vector<16x16xf32>
    %102 = vector.extract_strided_slice %101 {offsets = [0, 0], sizes = [8, 8], strides = [1, 1]} : vector<16x16xf32> to vector<8x8xf32>
    %c0_57 = arith.constant 0 : index
    %c3 = arith.constant 3 : index
    %c0_58 = arith.constant 0 : index
    %c0_59 = arith.constant 0 : index
    %103 = vector.load %arg10[%c0_57, %c3, %c0_58, %c0_59] : memref<2x4x8x8xf32, #tpu.memory_space<vmem>>, vector<1x1x8x8xf32>
    %104 = vector.shape_cast %103 : vector<1x1x8x8xf32> to vector<8x8xf32>
    %105 = vector.shape_cast %102 : vector<8x8xf32> to vector<1x1x8x8xf32>
    tpu.vector_store %arg10[%c0_57, %c3, %c0_58, %c0_59], %105 {strides = array<i32>} : memref<2x4x8x8xf32, #tpu.memory_space<vmem>>, vector<1x1x8x8xf32>,
    %106 = vector.extract_strided_slice %101 {offsets = [8, 8], sizes = [8, 8], strides = [1, 1]} : vector<16x16xf32> to vector<8x8xf32>
    %c1_60 = arith.constant 1 : index
    %c3_61 = arith.constant 3 : index
    %c0_62 = arith.constant 0 : index
    %c0_63 = arith.constant 0 : index
    %107 = vector.load %arg10[%c1_60, %c3_61, %c0_62, %c0_63] : memref<2x4x8x8xf32, #tpu.memory_space<vmem>>, vector<1x1x8x8xf32>
    %108 = vector.shape_cast %107 : vector<1x1x8x8xf32> to vector<8x8xf32>
    %109 = vector.shape_cast %106 : vector<8x8xf32> to vector<1x1x8x8xf32>
    tpu.vector_store %arg10[%c1_60, %c3_61, %c0_62, %c0_63], %109 {strides = array<i32>} : memref<2x4x8x8xf32, #tpu.memory_space<vmem>>, vector<1x1x8x8xf32>,
    %110 = tpu.concatenate %44, %63, %82, %101 in 1 : vector<16x16xf32>, vector<16x16xf32>, vector<16x16xf32>, vector<16x16xf32> -> vector<16x64xf32>
    %111 = tpu.concatenate %27, %27, %27, %27 in 0 : vector<16x32xf32>, vector<16x32xf32>, vector<16x32xf32>, vector<16x32xf32> -> vector<64x32xf32>
    %112 = arith.mulf %111, %28 : vector<64x32xf32>
    %cst_64 = arith.constant dense<0.000000e+00> : vector<16x32xf32>
    %113 = tpu.matmul %110, %112, %cst_64 {dimension_numbers = #tpu.dot_dimension_numbers<[1], [0], [0], [1], [0, 0, 1, 1], [], []>} : vector<16x64xf32>, vector<64x32xf32>, vector<16x32xf32> -> vector<16x32xf32>
    %c0_65 = arith.constant 0 : index
    %c0_66 = arith.constant 0 : index
    %114 = vector.load %arg5[%c0_65, %c0_66] : memref<32x32xf32, #tpu.memory_space<vmem>>, vector<32x32xf32>
    %cst_67 = arith.constant dense<0.000000e+00> : vector<16x32xf32>
    %115 = tpu.matmul %113, %114, %cst_67 {dimension_numbers = #tpu.dot_dimension_numbers<[1], [0], [0], [1], [0, 0, 1, 1], [], []>} : vector<16x32xf32>, vector<32x32xf32>, vector<16x32xf32> -> vector<16x32xf32>
    %c0_68 = arith.constant 0 : index
    %c0_69 = arith.constant 0 : index
    %116 = vector.load %arg6[%c0_68, %c0_69] : memref<1x32xf32, #tpu.memory_space<vmem>>, vector<1x32xf32>
    %117 = vector.shape_cast %116 : vector<1x32xf32> to vector<32xf32>
    %118 = vector.shape_cast %117 : vector<32xf32> to vector<1x32xf32>
    %119 = vector.broadcast %118 : vector<1x32xf32> to vector<16x32xf32>
    %120 = arith.addf %115, %119 : vector<16x32xf32>
    %121 = vector.extract_strided_slice %120 {offsets = [0, 0], sizes = [8, 32], strides = [1, 1]} : vector<16x32xf32> to vector<8x32xf32>
    %c0_70 = arith.constant 0 : index
    %c0_71 = arith.constant 0 : index
    %c0_72 = arith.constant 0 : index
    %122 = vector.load %arg9[%c0_70, %c0_71, %c0_72] : memref<2x8x32xf32, #tpu.memory_space<vmem>>, vector<1x8x32xf32>
    %123 = vector.shape_cast %122 : vector<1x8x32xf32> to vector<8x32xf32>
    %124 = vector.shape_cast %121 : vector<8x32xf32> to vector<1x8x32xf32>
    tpu.vector_store %arg9[%c0_70, %c0_71, %c0_72], %124 {strides = array<i32>} : memref<2x8x32xf32, #tpu.memory_space<vmem>>, vector<1x8x32xf32>,
    %125 = vector.extract_strided_slice %120 {offsets = [8, 0], sizes = [8, 32], strides = [1, 1]} : vector<16x32xf32> to vector<8x32xf32>
    %c1_73 = arith.constant 1 : index
    %c0_74 = arith.constant 0 : index
    %c0_75 = arith.constant 0 : index
    %126 = vector.load %arg9[%c1_73, %c0_74, %c0_75] : memref<2x8x32xf32, #tpu.memory_space<vmem>>, vector<1x8x32xf32>
    %127 = vector.shape_cast %126 : vector<1x8x32xf32> to vector<8x32xf32>
    %128 = vector.shape_cast %125 : vector<8x32xf32> to vector<1x8x32xf32>
    tpu.vector_store %arg9[%c1_73, %c0_74, %c0_75], %128 {strides = array<i32>} : memref<2x8x32xf32, #tpu.memory_space<vmem>>, vector<1x8x32xf32>,
    return
  }
}

</mosaic_0001>

<bundles_post_ra>
// kernel: tpu_custom_call.1
= control target key start
LH: loop header
LB: loop body
LE: loop exit
PB: predicated region body
PF: predicated region fallthrough
CT: control target
= control target key end

     0   :  { %16 = vsyncpa [#allocation3], 0  ;;  %s1720_s0 = inlined_call_operand.hbm [shape: f32[2,8,32], index: 0, kind: input, shape index: {}]   ;;  %s1721_s1 = inlined_call_operand.hbm [shape: f32[2,8,32], index: 1, kind: input, shape index: {}]   ;;  %s1722_s2 = inlined_call_operand.hbm [shape: f32[2,8,32], index: 2, kind: input, shape index: {}]   ;;  %s1723_s3 = inlined_call_operand.vmem [shape: f32[96,96], index: 3, kind: input, shape index: {}]   ;;  %s1724_s4 = inlined_call_operand.vmem [shape: f32[1,96], index: 4, kind: input, shape index: {}]   ;;  %s1725_s5 = inlined_call_operand.hbm [shape: f32[32,32], index: 5, kind: input, shape index: {}]   ;;  %s1726_s6 = inlined_call_operand.vmem [shape: f32[1,32], index: 6, kind: input, shape index: {}]   ;;  %s1727_s7 = inlined_call_operand.vmem [shape: f32[16,64], index: 7, kind: input, shape index: {}]   ;;  %s1728_s8 = inlined_call_operand.vmem [shape: f32[64,32], index: 8, kind: input, shape index: {}]   ;;  %s1729_s9 = inlined_call_operand.hbm [shape: f32[2,8,32], index: 9, kind: output, shape index: {0}]   ;;  %s1730_s10 = inlined_call_operand.hbm [shape: f32[2,4,8,8], index: 10, kind: output, shape index: {1}]  }
   0x1   :  { %17 = vsyncpa [#allocation6], 0 }
   0x2   :  { %18 = vsyncpa [#allocation9], 0 }
   0x3   :  { %19 = vsyncpa [#allocation4], 0 }
   0x4   :  { %20 = vsyncpa [#allocation12], 0  ;;  %s1275_s13 = smov [#allocation5]   ;;  %s1276_s15 = smov [#allocation2]  }
   0x5   :  { %s38_s14 = sshll.u32 %s1275_s13, 4  ;;  %s26_s16 = sshll.u32 %s1276_s15, 4  ;;  %s39_s14 = int_to_ptr.vmem [resolvable:$true] %s38_s14  ;;  %s1347_s16 = int_to_ptr.vmem [resolvable:$true] %s26_s16 }
   0x6   :  { %s1133_s19 = scalar_lea.hbm %s1721_s1, 256 }
   0x7   :  { %p1134_p0 = scmp.ne.s32.totalorder %s1721_s1, %s1133_s19  ;;  %p1137_p1 = scmp.lt.u32.totalorder %s1133_s19, %s1721_s1 }
   0x9   :  { %p1139_p2 = pnand %p1137_p1, %p1134_p0 }
   0xb   :  { %1142 = shalt.err (!%p1139_p2)
}
   0xc   :  { %s1143_s24 = scalar_lea.vmem %s39_s14, 256  ;;  %p1148_p4 = scmp.lt.s32.totalorder %s39_s14, %s39_s14 }
   0xd   :  { %p1144_p3 = scmp.ne.s32.totalorder %s39_s14, %s1143_s24  ;;  %p1149_p5 = scmp.lt.s32.totalorder %s1143_s24, %s1143_s24 }
   0xf   :  { %p1150_p6 = por %p1149_p5, %p1148_p4 }
  0x11   :  { %p1151_p7 = pnand %p1150_p6, %p1144_p3 }
  0x13   :  { %1154 = shalt.err (!%p1151_p7)
}
  0x14   :  { %s1277_s25 = smov 128   ;;  %s1278_s26 = smov 8  }
  0x15   :  { %44 = dma.hbm_to_vmem [thread:$0]  %s1721_s1, 256, %s39_s14, [#allocation6], %s1277_s25, %s1277_s25, %s1278_s26  }
  0x16   :  { %s1155_s11 = scalar_lea.hbm %s1720_s0, 256 }
  0x17   :  { %p1156_p8 = scmp.ne.s32.totalorder %s1720_s0, %s1155_s11  ;;  %p1159_p9 = scmp.lt.u32.totalorder %s1155_s11, %s1720_s0 }
  0x19   :  { %p1161_p10 = pnand %p1159_p9, %p1156_p8 }
  0x1b   :  { %1164 = shalt.err (!%p1161_p10)
}
  0x1c   :  { %s1165_s18 = scalar_lea.vmem %s1347_s16, 256  ;;  %p1170_p12 = scmp.lt.s32.totalorder %s1347_s16, %s1347_s16 }
  0x1d   :  { %p1166_p11 = scmp.ne.s32.totalorder %s1347_s16, %s1165_s18  ;;  %p1171_p13 = scmp.lt.s32.totalorder %s1165_s18, %s1165_s18 }
  0x1f   :  { %p1172_p0 = por %p1171_p13, %p1170_p12 }
  0x21   :  { %p1173_p1 = pnand %p1172_p0, %p1166_p11 }
  0x23   :  { %1176 = shalt.err (!%p1173_p1)
}
  0x24   :  { %32 = dma.hbm_to_vmem [thread:$0]  %s1720_s0, 256, %s1347_s16, [#allocation3], %s1277_s25, %s1277_s25, %s1278_s26  }
  0x25   :  { %s1279_s19 = smov [#allocation7]   ;;  %s1280_s21 = smov [#allocation8]  }
  0x26   :  { %s50_s20 = sshll.u32 %s1279_s19, 4  ;;  %s66_s22 = sshll.u32 %s1280_s21, 4  ;;  %s51_s20 = int_to_ptr.vmem [resolvable:$true] %s50_s20  ;;  %s1384_s22 = int_to_ptr.vmem [resolvable:$true] %s66_s22 }
  0x27   :  { %s1177_s27 = scalar_lea.hbm %s1722_s2, 256 }
  0x28   :  { %p1178_p2 = scmp.ne.s32.totalorder %s1722_s2, %s1177_s27  ;;  %p1181_p3 = scmp.lt.u32.totalorder %s1177_s27, %s1722_s2 }
  0x2a   :  { %p1183_p4 = pnand %p1181_p3, %p1178_p2 }
  0x2c   :  { %1186 = shalt.err (!%p1183_p4)
}
  0x2d   :  { %s1187_s0 = scalar_lea.vmem %s51_s20, 256  ;;  %p1192_p6 = scmp.lt.s32.totalorder %s51_s20, %s51_s20 }
  0x2e   :  { %p1188_p5 = scmp.ne.s32.totalorder %s51_s20, %s1187_s0  ;;  %p1193_p7 = scmp.lt.s32.totalorder %s1187_s0, %s1187_s0 }
  0x30   :  { %p1194_p8 = por %p1193_p7, %p1192_p6 }
  0x32   :  { %p1195_p9 = pnand %p1194_p8, %p1188_p5 }
  0x34   :  { %1198 = shalt.err (!%p1195_p9)
}
  0x35   :  { %56 = dma.hbm_to_vmem [thread:$0]  %s1722_s2, 256, %s51_s20, [#allocation6], %s1277_s25, %s1277_s25, %s1278_s26  }
  0x36   :  { %s1199_s17 = scalar_lea.hbm %s1725_s5, 512 }
  0x37   :  { %p1200_p10 = scmp.ne.s32.totalorder %s1725_s5, %s1199_s17  ;;  %p1203_p11 = scmp.lt.u32.totalorder %s1199_s17, %s1725_s5 }
  0x39   :  { %p1205_p12 = pnand %p1203_p11, %p1200_p10 }
  0x3b   :  { %1208 = shalt.err (!%p1205_p12)
}
  0x3c   :  { %s1209_s21 = scalar_lea.vmem %s1384_s22, 512  ;;  %p1214_p0 = scmp.lt.s32.totalorder %s1384_s22, %s1384_s22 }
  0x3d   :  { %p1210_p13 = scmp.ne.s32.totalorder %s1384_s22, %s1209_s21  ;;  %p1215_p1 = scmp.lt.s32.totalorder %s1209_s21, %s1209_s21 }
  0x3f   :  { %p1216_p2 = por %p1215_p1, %p1214_p0 }
  0x41   :  { %p1217_p3 = pnand %p1216_p2, %p1210_p13 }
  0x43   :  { %1220 = shalt.err (!%p1217_p3)
}
  0x44   :  { %72 = dma.hbm_to_vmem [thread:$0]  %s1725_s5, 512, %s1384_s22, [#allocation9], %s1277_s25, %s1277_s25, %s1278_s26  }
  0x45   :  { %1265 = dma.done.wait [#allocation3], 256  }
  0x46   :  { %1266 = vsyncadd [#allocation3], 4294967040 }
  0x47   :  { %1267 = dma.done.wait [#allocation6], 512  }
  0x48   :  { %1268 = vsyncadd [#allocation6], 4294966784 }
  0x49   :  { %1269 = dma.done.wait [#allocation9], 512  }
  0x4a   :  { %1270 = vsyncadd [#allocation9], 4294966784  ;;  %v94_v0 = vld [vmem:[#allocation5] sm:$0xff]  ;;  %v97_v1 = vld [vmem:[#allocation7] sm:$0xff]  ;;  %s1281_s23 = smov 32   ;;  %s1282_s24 = smov 64  }
  0x4b   :  { %102 = vrot.lane.b32.xlu0 %v94_v0, %s1281_s23  ;;  %110 = vrot.lane.b32.xlu1 %v97_v1, %s1282_s24  ;;  %v96_v2 = vld [vmem:[#allocation5 + $0x8] sm:$0xff]  ;;  %v122_v3 = vld [vmem:[%s1723_s3] sm:$0xff]  ;;  %v123_v4 = vld [vmem:[%s1723_s3 + $0x8] sm:$0xff]  ;;  %vm116_vm0 = vcmask 261120   ;;  %vm119_vm1 = vcmask 523264   ;;  %vm141_vm2 = vcmask 785408  }
  0x4c   :  { %v99_v5 = vld [vmem:[#allocation7 + $0x8] sm:$0xff]  ;;  %v972_v6 = vpack.c.bf16 %v123_v4, %v122_v3  ;;  %v124_v7 = vld [vmem:[%s1723_s3 + $0x10] sm:$0xff]  ;;  %v125_v8 = vld [vmem:[%s1723_s3 + $0x18] sm:$0xff]  ;;  %vm470_vm4 = vcmask 392448   ;;  %vm427_vm5 = vcmask 261248   ;;  %vm513_vm6 = vcmask 523648  }
  0x4d   :  { %v976_v9 = vpack.c.bf16 %v125_v8, %v124_v7  ;;  %v126_v10 = vld [vmem:[%s1723_s3 + $0x20] sm:$0xff]  ;;  %v127_v11 = vld [vmem:[%s1723_s3 + $0x28] sm:$0xff]  ;;  %v128_v15 = vld [vmem:[%s1723_s3 + $0x30] sm:$0xff]  ;;  %vm396_vm7 = vcmask 130048   ;;  %s1285_s22 = smov 80   ;;  %s1286_s29 = smov 120  }
  0x4e   :  { %973 = vmatprep.subr.bf16.mxu0 %v972_v6  ;;  %v1446_v12 = vld [vmem:[%s1728_s8 + $0x8] sm:$0xff]  ;;  %v1451_v13 = vld [vmem:[%s1728_s8] sm:$0xff]  ;;  %v980_v14 = vpack.c.bf16 %v127_v11, %v126_v10  ;;  %v129_v16 = vld [vmem:[%s1723_s3 + $0x38] sm:$0xff]  ;;  %vm419_vm8 = vcmask 64512   ;;  %s1287_s30 = smov 104   ;;  %vm560_vm9 = vcmask 392192  }
  0x4f   :  { %104 = vrot.lane.b32.xlu0 %v96_v2, %s1281_s23  ;;  %112 = vrot.lane.b32.xlu1 %v99_v5, %s1282_s24  ;;  %v1466_v17 = vld [vmem:[%s1728_s8 + $0x18] sm:$0xff]  ;;  %v1471_v18 = vld [vmem:[%s1728_s8 + $0x10] sm:$0xff]  ;;  %v984_v19 = vpack.c.bf16 %v129_v16, %v128_v15  ;;  %v91_v30 = vld [vmem:[#allocation2] sm:$0xff]  ;;  %s1289_s11 = smov 72   ;;  %s1290_s0 = smov [#allocation11]  }
  0x50   :  { %975 = vmatpush3.bf16.msra.mxu0 %v972_v6  ;;  %v130_v20 = vld [vmem:[%s1723_s3 + $0x40] sm:$0xff]  ;;  %v131_v21 = vld [vmem:[%s1723_s3 + $0x48] sm:$0xff]  ;;  %v132_v25 = vld [vmem:[%s1723_s3 + $0x50] sm:$0xff]  ;;  %s820_s16 = sshll.u32 %s1290_s0, 4  ;;  %s821_s16 = int_to_ptr.vmem [resolvable:$true] %s820_s16 }
  0x51   :  { %977 = vmatprep.subr.bf16.mxu0 %v976_v9  ;;  %v1486_v22 = vld [vmem:[%s1728_s8 + $0x28] sm:$0xff]  ;;  %v1491_v23 = vld [vmem:[%s1728_s8 + $0x20] sm:$0xff]  ;;  %v988_v24 = vpack.c.bf16 %v131_v21, %v130_v20  ;;  %v133_v26 = vld [vmem:[%s1723_s3 + $0x58] sm:$0xff]  ;;  %s1221_s12 = scalar_lea.vmem %s821_s16, 1024  ;;  %p1226_p5 = scmp.lt.s32.totalorder %s821_s16, %s821_s16 }
  0x52   :  { %v1506_v27 = vld [vmem:[%s1728_s8 + $0x38] sm:$0xff]  ;;  %v1511_v28 = vld [vmem:[%s1728_s8 + $0x30] sm:$0xff]  ;;  %v992_v29 = vpack.c.bf16 %v133_v26, %v132_v25  ;;  %v93_v35 = vld [vmem:[#allocation2 + $0x8] sm:$0xff]  ;;  %p1222_p4 = scmp.ne.s32.totalorder %s821_s16, %s1221_s12  ;;  %p1227_p6 = scmp.lt.s32.totalorder %s1221_s12, %s1221_s12 }
  0x53   :  { %243 = vrot.lane.b32.xlu1 %v1446_v12, %s1281_s23  ;;  %241 = vrot.lane.b32.xlu0 %v1451_v13, %s1281_s23  ;;  %v838_v46 = vld [vmem:[%s1724_s4] ss:$0 sm:$0xff]  ;;  %s1283_s4 = smov 96   ;;  %vm1544_vm3 = vmpackc.low %vm116_vm0, %vm116_vm0  ;;  %v274_v26 = vld [vmem:[%s1727_s7 + $0x8] sm:$0xff] }
  0x54   :  { %979 = vmatpush3.bf16.msra.mxu0 %v976_v9  ;;  %p1228_p7 = por %p1227_p6, %p1226_p5 }
  0x55   :  { %981 = vmatprep.subr.bf16.mxu0 %v980_v14 }
  0x56   :  { %p1229_p8 = pnand %p1228_p7, %p1222_p4 }
  0x57   :  { %247 = vrot.lane.b32.xlu1 %v1466_v17, %s1281_s23  ;;  %245 = vrot.lane.b32.xlu0 %v1471_v18, %s1281_s23 }
  0x58   :  { %983 = vmatpush3.bf16.msra.mxu0 %v980_v14 }
  0x59   :  { %985 = vmatprep.subr.bf16.mxu0 %v984_v19 }
  0x5b   :  { %251 = vrot.lane.b32.xlu1 %v1486_v22, %s1281_s23  ;;  %249 = vrot.lane.b32.xlu0 %v1491_v23, %s1281_s23 }
  0x5c   :  { %987 = vmatpush3.bf16.msra.mxu0 %v984_v19 }
  0x5d   :  { %989 = vmatprep.subr.bf16.mxu0 %v988_v24 }
  0x5f   :  { %255 = vrot.lane.b32.xlu1 %v1506_v27, %s1281_s23  ;;  %253 = vrot.lane.b32.xlu0 %v1511_v28, %s1281_s23 }
  0x60   :  { %991 = vmatpush3.bf16.msra.mxu0 %v988_v24 }
  0x61   :  { %993 = vmatprep.subr.bf16.mxu0 %v992_v29 }
  0x64   :  { %995 = vmatpush3.bf16.msra.mxu0 %v992_v29 }
  0xbd   :  { %v103_v31 = vpop.permute.xlu0 %102  ;;  %v111_v32 = vpop.permute.xlu1 %110 }
  0xbe   :  { %v117_v33 = vsel %vm116_vm0, %v91_v30, %v103_v31  ;;  %v273_v30 = vld [vmem:[%s1727_s7] sm:$0xff]  ;;  %s1284_s7 = smov 112  }
  0xbf   :  { %v120_v34 = vsel %vm119_vm1, %v117_v33, %v111_v32 }
  0xc0   :  { %920 = vmatprep.mubr.msk.f32.mxu0 %vm141_vm2, %v120_v34 }
  0xc1   :  { %v105_v36 = vpop.permute.xlu0 %104  ;;  %v113_v37 = vpop.permute.xlu1 %112 }
  0xc2   :  { %v118_v38 = vsel %vm116_vm0, %v93_v35, %v105_v36 }
  0xc3   :  { %v121_v39 = vsel %vm119_vm1, %v118_v38, %v113_v37 }
  0xc4   :  { %921 = vmatmul.mubr.msk.f32.vlgmr.msra.gmra.mrb[0].mxu0 %vm141_vm2, %v121_v39 }
  0xc5   :  { %v244_v40 = vpop.permute.xlu1 %243  ;;  %v242_v41 = vpop.permute.xlu0 %241 }
  0xc9   :  { %v248_v42 = vpop.permute.xlu1 %247  ;;  %v246_v43 = vpop.permute.xlu0 %245 }
  0xcd   :  { %v252_v44 = vpop.permute.xlu1 %251  ;;  %v250_v45 = vpop.permute.xlu0 %249 }
  0xd1   :  { %v256_v51 = vpop.permute.xlu1 %255  ;;  %v254_v52 = vpop.permute.xlu0 %253 }
 0x197   :  { %v922_v47 = vpop.f32.mrb[0].mxu0 }
 0x198   :  { %v1524_v48 = vadd.f32 %v922_v47, %v838_v46  ;;  %v214_v49 = vpop.f32.mrb[1].mxu0 }
 0x199   :  { %v1526_v50 = vadd.f32 %v838_v46, %v214_v49 }
 0x19a   :  { %v268_v53 = vmul.f32 %v248_v42, %v1524_v48  ;;  %v266_v54 = vmul.f32 %v244_v40, %v1524_v48  ;;  %v272_v58 = vmul.f32 %v256_v51, %v1524_v48  ;;  %v270_v59 = vmul.f32 %v252_v44, %v1524_v48 }
 0x19b   :  { %v223_v55 = vmul.f32 0.35355338, %v1526_v50  ;;  %v267_v56 = vmul.f32 %v246_v43, %v1526_v50  ;;  %v265_v57 = vmul.f32 %v242_v41, %v1526_v50  ;;  %v271_v60 = vmul.f32 %v254_v52, %v1526_v50 }
 0x19c   :  { %v269_v63 = vmul.f32 %v250_v45, %v1526_v50  ;;  %v224_v25 = vmul.f32 0.35355338, %v1524_v48 }
 0x19d   :  { %939 = vmatprep.mubr.msk.f32.mxu1 %vm116_vm0, %v223_v55  ;;  %v1066_v61 = vpack.i.bf16 %v268_v53, %v267_v56  ;;  %v1061_v62 = vpack.i.bf16 %v266_v54, %v265_v57  ;;  %v1076_v0 = vpack.i.bf16 %v272_v58, %v271_v60 }
 0x19e   :  { %v1071_v1 = vpack.i.bf16 %v270_v59, %v269_v63 }
 0x19f   :  { %1067 = vrot.lane.b32.xlu1 %v1066_v61, %s1283_s4  ;;  %1062 = vrot.lane.b32.xlu0 %v1061_v62, %s1283_s4 }
 0x1a3   :  { %1077 = vrot.lane.b32.xlu1 %v1076_v0, %s1283_s4  ;;  %1072 = vrot.lane.b32.xlu0 %v1071_v1, %s1283_s4 }
 0x211   :  { %v1068_v2 = vpop.permute.xlu1 %1067  ;;  %v1063_v3 = vpop.permute.xlu0 %1062 }
 0x212   :  { %v1070_v4 = vunpack.i.h.bf16 %v1068_v2  ;;  %v1069_v5 = vunpack.i.l.bf16 %v1068_v2  ;;  %v1065_v6 = vunpack.i.h.bf16 %v1063_v3  ;;  %v1064_v7 = vunpack.i.l.bf16 %v1063_v3 }
 0x214   :  { %v996_v9 = vpack.c.bf16 %v1065_v6, %v1064_v7  ;;  %v1002_v10 = vpack.c.bf16 %v1070_v4, %v1069_v5 }
 0x215   :  { %v1073_v11 = vpop.permute.xlu0 %1072  ;;  %v1078_v19 = vpop.permute.xlu1 %1077 }
 0x216   :  { %998 = vmatprep.subr.msk.bf16.mxu1 %vm1544_vm3, %v996_v9  ;;  %v1075_v14 = vunpack.i.h.bf16 %v1073_v11  ;;  %v1074_v15 = vunpack.i.l.bf16 %v1073_v11  ;;  %v1080_v20 = vunpack.i.h.bf16 %v1078_v19  ;;  %v1079_v21 = vunpack.i.l.bf16 %v1078_v19 }
 0x217   :  { %1001 = vmatpush3.bf16.xpose.msk.msra.mxu1 %vm1544_vm3, %v996_v9 }
 0x218   :  { %1004 = vmatprep.subr.msk.bf16.mxu1 %vm1544_vm3, %v1002_v10  ;;  %v1008_v16 = vpack.c.bf16 %v1075_v14, %v1074_v15  ;;  %v1014_v24 = vpack.c.bf16 %v1080_v20, %v1079_v21 }
 0x21f   :  { %1007 = vmatpush3.bf16.xpose.msk.msra.mxu1 %vm1544_vm3, %v1002_v10 }
 0x220   :  { %1010 = vmatprep.subr.msk.bf16.mxu1 %vm1544_vm3, %v1008_v16 }
 0x227   :  { %1013 = vmatpush3.bf16.xpose.msk.msra.mxu1 %vm1544_vm3, %v1008_v16 }
 0x228   :  { %1016 = vmatprep.subr.msk.bf16.mxu1 %vm1544_vm3, %v1014_v24 }
 0x22f   :  { %1019 = vmatpush3.bf16.xpose.msk.msra.mxu1 %vm1544_vm3, %v1014_v24 }
 0x236   :  { %940 = vmatmul.mubr.msk.f32.vlgmr.msra.gmra.mrb[0].mxu1 %vm116_vm0, %v224_v25 }
 0x309   :  { %v941_v29 = vpop.f32.mrb[0].mxu1 }
 0x30a   :  { %v1572_v31 = vadd.f32 %v941_v29, %v274_v26  ;;  %v387_v32 = vpop.f32.mrb[1].mxu1 }
 0x30b   :  { %v1574_v33 = vadd.f32 %v387_v32, %v273_v30 }
 0x30c   :  { %v474_v34 = vsel %vm470_vm4, %v1572_v31, -inf  ;;  %v431_v35 = vsel %vm427_vm5, %v1572_v31, -inf  ;;  %v517_v40 = vsel %vm513_vm6, %v1572_v31, -inf  ;;  %v400_v41 = vsel %vm396_vm7, %v1572_v31, -inf }
 0x30d   :  { %475 = vmax.xlane.f32.xlu0 %v474_v34  ;;  %432 = vmax.xlane.f32.xlu1 %v431_v35  ;;  %v514_v36 = vsel %vm513_vm6, %v1574_v33, -inf  ;;  %v428_v37 = vsel %vm427_vm5, %v1574_v33, -inf  ;;  %v471_v38 = vsel %vm470_vm4, %v1574_v33, -inf  ;;  %v397_v39 = vsel %vm396_vm7, %v1574_v33, -inf }
 0x311   :  { %515 = vmax.xlane.f32.xlu1 %v514_v36  ;;  %429 = vmax.xlane.f32.xlu0 %v428_v37 }
 0x315   :  { %472 = vmax.xlane.f32.xlu0 %v471_v38  ;;  %398 = vmax.xlane.f32.xlu1 %v397_v39 }
 0x319   :  { %518 = vmax.xlane.f32.xlu0 %v517_v40 }
 0x31d   :  { %401 = vmax.xlane.f32.xlu0 %v400_v41 }
 0x333   :  { %563 = vrot.lane.b32.xlu0 %v1451_v13, %s1282_s24 }
 0x39a   :  { %v476_v42 = vpop.xlane.xlu0 %475  ;;  %v433_v43 = vpop.xlane.xlu1 %432 }
 0x39b   :  { %v478_v44 = vsub.f32 %v1572_v31, %v476_v42  ;;  %v435_v45 = vsub.f32 %v1572_v31, %v433_v43 }
 0x39d   :  { %v481_v46 = vmul.f32 1.442695, %v478_v44  ;;  %v438_v47 = vmul.f32 1.442695, %v435_v45 }
 0x39e   :  { %v516_v49 = vpop.xlane.xlu1 %515  ;;  %v430_v51 = vpop.xlane.xlu0 %429 }
 0x39f   :  { %1101 = vpow2.f32 %v481_v46  ;;  %v520_v52 = vsub.f32 %v1574_v33, %v516_v49  ;;  %v434_v56 = vsub.f32 %v1574_v33, %v430_v51 }
 0x3a0   :  { %1103 = vpow2.f32 %v438_v47 }
 0x3a1   :  { %v522_v54 = vmul.f32 1.442695, %v520_v52  ;;  %v436_v60 = vmul.f32 1.442695, %v434_v56 }
 0x3a2   :  { %v473_v53 = vpop.xlane.xlu0 %472 }
 0x3a3   :  { %1105 = vpow2.f32 %v522_v54  ;;  %v477_v61 = vsub.f32 %v1574_v33, %v473_v53 }
 0x3a5   :  { %v479_v62 = vmul.f32 1.442695, %v477_v61 }
 0x3a6   :  { %v519_v55 = vpop.xlane.xlu0 %518 }
 0x3a7   :  { %v521_v13 = vsub.f32 %v1572_v31, %v519_v55 }
 0x3a9   :  { %v1593_v57 = vpop.eup %1101  ;;  %v524_v58 = vmul.f32 1.442695, %v521_v13 }
 0x3aa   :  { %v1595_v59 = vpop.eup %1103  ;;  %487 = vrot.lane.b32.xlu1 %v1593_v57, %s1283_s4  ;;  %v402_v2 = vpop.xlane.xlu0 %401 }
 0x3ab   :  { %1107 = vpow2.f32 %v524_v58  ;;  %444 = vrot.lane.b32.xlu0 %v1595_v59, %s1284_s7  ;;  %v404_v3 = vsub.f32 %v1572_v31, %v402_v2 }
 0x3ac   :  { %1109 = vpow2.f32 %v436_v60 }
 0x3ad   :  { %v1604_v63 = vpop.eup %1105  ;;  %1111 = vpow2.f32 %v479_v62  ;;  %v407_v5 = vmul.f32 1.442695, %v404_v3 }
 0x3af   :  { %567 = vrot.lane.b32.xlu0 %v1471_v18, %s1282_s24  ;;  %1113 = vpow2.f32 %v407_v5 }
 0x3b3   :  { %528 = vrot.lane.b32.xlu0 %v1604_v63, %s1285_s22 }
 0x3b5   :  { %v1608_v0 = vpop.eup %1107 }
 0x3b6   :  { %530 = vrot.lane.b32.xlu1 %v1608_v0, %s1285_s22  ;;  %v1614_v1 = vpop.eup %1109 }
 0x3b7   :  { %571 = vrot.lane.b32.xlu0 %v1491_v23, %s1282_s24  ;;  %v1620_v18 = vpop.eup %1111  ;;  %v399_v23 = vpop.xlane.xlu1 %398 }
 0x3b8   :  { %v403_v4 = vsub.f32 %v1574_v33, %v399_v23 }
 0x3b9   :  { %v1114_v6 = vpop.eup %1113 }
 0x3ba   :  { %442 = vrot.lane.b32.xlu1 %v1614_v1, %s1284_s7 }
 0x3bb   :  { %575 = vrot.lane.b32.xlu0 %v1511_v28, %s1282_s24  ;;  %v405_v28 = vmul.f32 1.442695, %v403_v4 }
 0x3bd   :  { %1115 = vpow2.f32 %v405_v28 }
 0x3be   :  { %485 = vrot.lane.b32.xlu1 %v1620_v18, %s1283_s4 }
 0x3c2   :  { %565 = vrot.lane.b32.xlu1 %v1446_v12, %s1282_s24  ;;  %v412_v12 = vsel %vm396_vm7, %v1114_v6, 0.0 }
 0x3c6   :  { %569 = vrot.lane.b32.xlu1 %v1466_v17, %s1282_s24  ;;  %v564_v17 = vpop.permute.xlu0 %563 }
 0x3c7   :  { %v1116_v7 = vpop.eup %1115  ;;  %v587_v24 = vmul.f32 %v564_v17, %v1526_v50 }
 0x3c8   :  { %v409_v8 = vsel %vm396_vm7, %v1116_v7, 0.0 }
 0x3ca   :  { %573 = vrot.lane.b32.xlu1 %v1486_v22, %s1282_s24 }
 0x3ce   :  { %577 = vrot.lane.b32.xlu1 %v1506_v27, %s1282_s24 }
 0x3da   :  { %413 = vadd.xlane.f32.xlu0 %v412_v12 }
 0x3de   :  { %410 = vadd.xlane.f32.xlu0 %v409_v8 }
 0x41c   :  { %v488_v11 = vpop.permute.xlu1 %487 }
 0x41d   :  { %v445_v9 = vpop.permute.xlu0 %444  ;;  %v494_v22 = vsel %vm396_vm7, %v488_v11, 0.0 }
 0x41e   :  { %v451_v10 = vsel %vm396_vm7, %v445_v9, 0.0 }
 0x41f   :  { %452 = vadd.xlane.f32.xlu0 %v451_v10 }
 0x421   :  { %v568_v16 = vpop.permute.xlu0 %567 }
 0x422   :  { %v589_v32 = vmul.f32 %v568_v16, %v1526_v50  ;;  %v710_v16 = vld [vmem:[#allocation8 + $0x10] sm:$0xff] }
 0x423   :  { %495 = vadd.xlane.f32.xlu0 %v494_v22 }
 0x425   :  { %v529_v20 = vpop.permute.xlu0 %528 }
 0x426   :  { %v534_v43 = vsel %vm396_vm7, %v529_v20, 0.0  ;;  %v711_v20 = vld [vmem:[#allocation8 + $0x18] sm:$0xff] }
 0x428   :  { %v531_v14 = vpop.permute.xlu1 %530 }
 0x429   :  { %v537_v27 = vsel %vm396_vm7, %v531_v14, 0.0  ;;  %v572_v30 = vpop.permute.xlu0 %571 }
 0x42a   :  { %538 = vadd.xlane.f32.xlu0 %v537_v27  ;;  %v591_v34 = vmul.f32 %v572_v30, %v1526_v50  ;;  %v708_v27 = vld [vmem:[#allocation8] sm:$0xff] }
 0x42c   :  { %v443_v15 = vpop.permute.xlu1 %442 }
 0x42d   :  { %v576_v38 = vpop.permute.xlu0 %575  ;;  %v448_v39 = vsel %vm396_vm7, %v443_v15, 0.0  ;;  %v709_v15 = vld [vmem:[#allocation8 + $0x8] sm:$0xff] }
 0x42e   :  { %v593_v52 = vmul.f32 %v576_v38, %v1526_v50 }
 0x430   :  { %v486_v19 = vpop.permute.xlu1 %485 }
 0x431   :  { %v491_v41 = vsel %vm396_vm7, %v486_v19, 0.0  ;;  %v1036_v19 = vpack.c.bf16 %v709_v15, %v708_v27 }
 0x433   :  { %1037 = vmatprep.subr.bf16.mxu1 %v1036_v19 }
 0x434   :  { %v566_v21 = vpop.permute.xlu1 %565  ;;  %1039 = vmatpush3.bf16.msra.mxu1 %v1036_v19 }
 0x435   :  { %v588_v25 = vmul.f32 %v566_v21, %v1524_v48  ;;  %v1040_v21 = vpack.c.bf16 %v711_v20, %v710_v16 }
 0x437   :  { %v1081_v26 = vpack.i.bf16 %v588_v25, %v587_v24  ;;  %1041 = vmatprep.subr.bf16.mxu1 %v1040_v21 }
 0x438   :  { %v570_v29 = vpop.permute.xlu1 %569  ;;  %1043 = vmatpush3.bf16.msra.mxu1 %v1040_v21 }
 0x439   :  { %1082 = vrot.lane.b32.xlu1 %v1081_v26, %s1282_s24  ;;  %v590_v31 = vmul.f32 %v570_v29, %v1524_v48 }
 0x43b   :  { %v1086_v36 = vpack.i.bf16 %v590_v31, %v589_v32 }
 0x43c   :  { %v574_v33 = vpop.permute.xlu1 %573 }
 0x43d   :  { %v592_v35 = vmul.f32 %v574_v33, %v1524_v48 }
 0x43f   :  { %v1091_v37 = vpack.i.bf16 %v592_v35, %v591_v34 }
 0x440   :  { %1087 = vrot.lane.b32.xlu0 %v1086_v36, %s1282_s24  ;;  %v578_v46 = vpop.permute.xlu1 %577 }
 0x441   :  { %1092 = vrot.lane.b32.xlu1 %v1091_v37, %s1282_s24  ;;  %v594_v51 = vmul.f32 %v578_v46, %v1524_v48 }
 0x443   :  { %v1096_v53 = vpack.i.bf16 %v594_v51, %v593_v52 }
 0x465   :  { %449 = vadd.xlane.f32.xlu1 %v448_v39 }
 0x467   :  { %v414_v40 = vpop.xlane.xlu0 %413 }
 0x468   :  { %1117 = vrcp.f32 %v414_v40 }
 0x469   :  { %492 = vadd.xlane.f32.xlu1 %v491_v41 }
 0x46b   :  { %v411_v42 = vpop.xlane.xlu0 %410 }
 0x46c   :  { %1119 = vrcp.f32 %v411_v42 }
 0x46d   :  { %535 = vadd.xlane.f32.xlu1 %v534_v43 }
 0x472   :  { %v1118_v44 = vpop.eup %1117 }
 0x473   :  { %v418_v45 = vmul.f32 %v1118_v44, %v1114_v6 }
 0x475   :  { %422 = vrot.lane.b32.xlu0 %v418_v45, %s1286_s29 }
 0x476   :  { %v1120_v47 = vpop.eup %1119 }
 0x477   :  { %v1651_v49 = vmul.f32 %v1120_v47, %v1116_v7 }
 0x479   :  { %420 = vst.msk [vmem:[#allocation11] sm:$0xff] %vm419_vm8, %v1651_v49 }
 0x47e   :  { %1097 = vrot.lane.b32.xlu1 %v1096_v53, %s1282_s24  ;;  %s1288_s24 = smov 88  }
 0x4ab   :  { %v1083_v54 = vpop.permute.xlu1 %1082 }
 0x4ac   :  { %v453_v55 = vpop.xlane.xlu0 %452  ;;  %v1085_v56 = vunpack.i.h.bf16 %v1083_v54  ;;  %v1084_v13 = vunpack.i.l.bf16 %v1083_v54 }
 0x4ad   :  { %1121 = vrcp.f32 %v453_v55 }
 0x4ae   :  { %v1020_v58 = vpack.c.bf16 %v1085_v56, %v1084_v13 }
 0x4b0   :  { %v496_v60 = vpop.xlane.xlu0 %495  ;;  %1021 = vmatprep.subr.bf16.mxu0 %v1020_v58 }
 0x4b1   :  { %1123 = vrcp.f32 %v496_v60  ;;  %1023 = vmatpush3.bf16.msra.mxu0 %v1020_v58 }
 0x4b3   :  { %v1093_v62 = vpop.permute.xlu1 %1092 }
 0x4b4   :  { %v1095_v3 = vunpack.i.h.bf16 %v1093_v62  ;;  %v1094_v4 = vunpack.i.l.bf16 %v1093_v62 }
 0x4b6   :  { %v1028_v17 = vpack.c.bf16 %v1095_v3, %v1094_v4 }
 0x4b7   :  { %v1122_v61 = vpop.eup %1121  ;;  %v539_v48 = vpop.xlane.xlu0 %538 }
 0x4b8   :  { %1125 = vrcp.f32 %v539_v48  ;;  %v457_v2 = vmul.f32 %v1122_v61, %v1595_v59 }
 0x4ba   :  { %465 = vrot.lane.b32.xlu0 %v457_v2, %s1287_s30  ;;  %v557_v12 = vsel %vm396_vm7, %v418_v45, %v457_v2 }
 0x4bb   :  { %v1124_v50 = vpop.eup %1123  ;;  %v1088_v23 = vpop.permute.xlu0 %1087 }
 0x4bc   :  { %v1090_v5 = vunpack.i.h.bf16 %v1088_v23  ;;  %v1089_v28 = vunpack.i.l.bf16 %v1088_v23  ;;  %v500_v6 = vmul.f32 %v1124_v50, %v1593_v57 }
 0x4be   :  { %v1024_v7 = vpack.c.bf16 %v1090_v5, %v1089_v28  ;;  %508 = vrot.lane.b32.xlu0 %v500_v6, %s1288_s24  ;;  %v559_v8 = vsel %vm116_vm0, %v557_v12, %v500_v6 }
 0x4c0   :  { %1025 = vmatprep.subr.bf16.mxu0 %v1024_v7 }
 0x4c1   :  { %1027 = vmatpush3.bf16.msra.mxu0 %v1024_v7 }
 0x4c2   :  { %v1126_v59 = vpop.eup %1125  ;;  %1029 = vmatprep.subr.bf16.mxu0 %v1028_v17 }
 0x4c3   :  { %v543_v9 = vmul.f32 %v1126_v59, %v1608_v0 }
 0x4c5   :  { %551 = vrot.lane.b32.xlu0 %v543_v9, %s1289_s11  ;;  %1031 = vmatpush3.bf16.msra.mxu0 %v1028_v17  ;;  %v562_v57 = vsel %vm560_vm9, %v559_v8, %v543_v9 }
 0x4e7   :  { %v423_v10 = vpop.permute.xlu0 %422 }
 0x4e8   :  { %426 = vst.msk [vmem:[#allocation11 + $0x20] sm:$0xff] %vm419_vm8, %v423_v10 }
 0x4f2   :  { %v450_v11 = vpop.xlane.xlu1 %449 }
 0x4f3   :  { %1127 = vrcp.f32 %v450_v11 }
 0x4f6   :  { %v493_v22 = vpop.xlane.xlu1 %492 }
 0x4f7   :  { %1129 = vrcp.f32 %v493_v22 }
 0x4fa   :  { %v536_v14 = vpop.xlane.xlu1 %535 }
 0x4fb   :  { %1131 = vrcp.f32 %v536_v14 }
 0x4fd   :  { %v1128_v0 = vpop.eup %1127 }
 0x4fe   :  { %v1098_v24 = vpop.permute.xlu1 %1097  ;;  %v456_v25 = vmul.f32 %v1128_v0, %v1614_v1 }
 0x4ff   :  { %v1100_v26 = vunpack.i.h.bf16 %v1098_v24  ;;  %v1099_v29 = vunpack.i.l.bf16 %v1098_v24 }
 0x500   :  { %459 = vrot.lane.b32.xlu1 %v456_v25, %s1284_s7  ;;  %v556_v1 = vsel %vm396_vm7, %v1651_v49, %v456_v25 }
 0x501   :  { %v1130_v30 = vpop.eup %1129  ;;  %v1032_v31 = vpack.c.bf16 %v1100_v26, %v1099_v29 }
 0x502   :  { %v499_v32 = vmul.f32 %v1130_v30, %v1620_v18 }
 0x503   :  { %1033 = vmatprep.subr.bf16.mxu0 %v1032_v31 }
 0x504   :  { %502 = vrot.lane.b32.xlu1 %v499_v32, %s1283_s4  ;;  %1035 = vmatpush3.bf16.msra.mxu0 %v1032_v31  ;;  %v558_v35 = vsel %vm116_vm0, %v556_v1, %v499_v32 }
 0x505   :  { %v1132_v33 = vpop.eup %1131 }
 0x506   :  { %v542_v34 = vmul.f32 %v1132_v33, %v1604_v63 }
 0x508   :  { %545 = vrot.lane.b32.xlu1 %v542_v34, %s1285_s22  ;;  %v561_v36 = vsel %vm560_vm9, %v558_v35, %v542_v34 }
 0x509   :  { %958 = vmatprep.mubr.msk.f32.mxu0 %vm119_vm1, %v561_v36 }
 0x50a   :  { %959 = vmatmul.mubr.msk.f32.vlgmr.msra.gmra.mrb[2].mxu0 %vm119_vm1, %v562_v57 }
 0x52c   :  { %v466_v18 = vpop.permute.xlu0 %465 }
 0x52d   :  { %469 = vst.msk [vmem:[#allocation11 + $0x28] sm:$0xff] %vm419_vm8, %v466_v18 }
 0x530   :  { %v509_v37 = vpop.permute.xlu0 %508 }
 0x531   :  { %512 = vst.msk [vmem:[#allocation11 + $0x30] sm:$0xff] %vm419_vm8, %v509_v37 }
 0x537   :  { %v552_v63 = vpop.permute.xlu0 %551 }
 0x538   :  { %555 = vst.msk [vmem:[#allocation11 + $0x38] sm:$0xff] %vm419_vm8, %v552_v63 }
 0x572   :  { %v460_v38 = vpop.permute.xlu1 %459 }
 0x573   :  { %463 = vst.msk [vmem:[#allocation11 + $0x8] sm:$0xff] %vm419_vm8, %v460_v38 }
 0x576   :  { %v503_v39 = vpop.permute.xlu1 %502 }
 0x577   :  { %506 = vst.msk [vmem:[#allocation11 + $0x10] sm:$0xff] %vm419_vm8, %v503_v39 }
 0x57a   :  { %v546_v40 = vpop.permute.xlu1 %545 }
 0x57b   :  { %549 = vst.msk [vmem:[#allocation11 + $0x18] sm:$0xff] %vm419_vm8, %v546_v40 }
 0x5dd   :  { %v960_v41 = vpop.f32.mrb[2].mxu0 }
 0x5de   :  { %v699_v42 = vpop.f32.mrb[3].mxu0 }
 0x5df   :  { %969 = vmatprep.mubr.msk.f32.mxu1 %vm116_vm0, %v699_v42 }
 0x5e0   :  { %970 = vmatmul.mubr.msk.f32.vlgmr.msra.gmra.mrb[2].mxu1 %vm116_vm0, %v960_v41 }
 0x5e1   :  { %1232 = shalt.err (!%p1229_p8)
}
 0x5e2   :  { %s1233_s17 = scalar_lea.hbm %s1730_s10, 1024 }
 0x5e3   :  { %p1234_p9 = scmp.ne.s32.totalorder %s1730_s10, %s1233_s17  ;;  %p1237_p10 = scmp.lt.u32.totalorder %s1233_s17, %s1730_s10 }
 0x5e5   :  { %p1239_p11 = pnand %p1237_p10, %p1234_p9 }
 0x5e7   :  { %1242 = shalt.err (!%p1239_p11)
}
 0x5e8   :  { %826 = dma.vmem_to_hbm [thread:$0]  %s821_s16, 1024, %s1730_s10, [#allocation12], %s1277_s25, %s1277_s25, %s1278_s26  }
 0x5e9   :  { %v853_v43 = vld [vmem:[%s1726_s6] ss:$0 sm:$0xff]  ;;  %s1291_s8 = smov [#allocation10]  }
 0x5ea   :  { %s808_s4 = sshll.u32 %s1291_s8, 4  ;;  %s809_s4 = int_to_ptr.vmem [resolvable:$true] %s808_s4 }
 0x5eb   :  { %s1243_s23 = scalar_lea.vmem %s809_s4, 256  ;;  %p1248_p13 = scmp.lt.s32.totalorder %s809_s4, %s809_s4 }
 0x5ec   :  { %p1244_p12 = scmp.ne.s32.totalorder %s809_s4, %s1243_s23  ;;  %p1249_p0 = scmp.lt.s32.totalorder %s1243_s23, %s1243_s23 }
 0x5ee   :  { %p1250_p1 = por %p1249_p0, %p1248_p13 }
 0x5f0   :  { %p1251_p2 = pnand %p1250_p1, %p1244_p12 }
 0x6b3   :  { %v971_v44 = vpop.f32.mrb[2].mxu1 }
 0x6b4   :  { %v797_v45 = vadd.f32 %v971_v44, %v853_v43  ;;  %v791_v46 = vpop.f32.mrb[3].mxu1 }
 0x6b5   :  { %v792_v47 = vadd.f32 %v853_v43, %v791_v46 }
 0x6b6   :  { %802 = vst.msk [vmem:[#allocation10 + $0x8] sm:$0xff] %vm116_vm0, %v797_v45 }
 0x6b7   :  { %800 = vst.msk [vmem:[#allocation10] sm:$0xff] %vm116_vm0, %v792_v47 }
 0x6b8   :  { %1254 = shalt.err (!%p1251_p2)
}
 0x6b9   :  { %s1255_s27 = scalar_lea.hbm %s1729_s9, 256 }
 0x6ba   :  { %p1256_p3 = scmp.ne.s32.totalorder %s1729_s9, %s1255_s27  ;;  %p1259_p4 = scmp.lt.u32.totalorder %s1255_s27, %s1729_s9 }
 0x6bc   :  { %p1261_p5 = pnand %p1259_p4, %p1256_p3 }
 0x6be   :  { %1264 = shalt.err (!%p1261_p5)
}
 0x6bf   :  { %814 = dma.vmem_to_hbm [thread:$0]  %s809_s4, 256, %s1729_s9, [#allocation4], %s1277_s25, %s1277_s25, %s1278_s26  }
 0x6c0   :  { %1271 = dma.done.wait [#allocation4], 256  }
 0x6c1   :  { %1272 = vsyncadd [#allocation4], 4294967040 }
 0x6c2   :  { %1273 = dma.done.wait [#allocation12], 1024  }
 0x6c3   :  { %1274 = vsyncadd [#allocation12], 4294966272 }
 0x6c4   :  { %833 = vsyncpa [#allocation3], 1 }
 0x6c5   :  { %834 = vsyncpa [#allocation6], 1 }
 0x6c6   :  { %835 = vsyncpa [#allocation9], 1 }
 0x6c7   :  { %836 = vsyncpa [#allocation4], 1 }
 0x6c8   :  { %837 = vsyncpa [#allocation12], 1 }

</bundles_post_ra>
